<compile_context>
chip_gen: v6e
topology: v6e:2x2x1
jax: 0.10.0
libtpu: 0.0.40
codegen_flags: <defaults>
</compile_context>

<pallas_src>
import jax
import jax.numpy as jnp
from jax.experimental import pallas as pl
from jax.experimental.pallas import tpu as pltpu


def _coupling_kernel(x_ref, h_ref, t_ref, w1s_ref, c1_ref, w2s_ref, c2_ref, y_ref):
    # Feature-major blocks: x/h/y are (D, TN), t is (1, TN); rows (TN) on lanes.
    x = x_ref[...]                        # (D, TN)
    h = h_ref[...]                        # (D, TN)
    t = t_ref[...]                        # (1, TN)

    w1xT = w1s_ref[0]                     # (H, D)  latent_net   L1 weight^T, input mask folded in
    w1hxT = w1s_ref[1]                    # (H, D)  latent_net_h L1 weight^T, input mask folded in
    w1tT = c1_ref[:, 0:1]                 # (H, 1)  t-column of latent_net   L1
    w1htT = c1_ref[:, 1:2]                # (H, 1)  t-column of latent_net_h L1
    b1T = c1_ref[:, 2:3]                  # (H, 1)
    b1hT = c1_ref[:, 3:4]                 # (H, 1)

    ws1T = w2s_ref[0]                     # (D, H)  fused L2+merge_scale (hid1 path), (1-mask)-scaled
    ws2T = w2s_ref[1]                     # (D, H)  fused L2+merge_scale (hid2 path)
    wh1T = w2s_ref[2]                     # (D, H)  fused L2+merge_shift (hid1 path)
    wh2T = w2s_ref[3]                     # (D, H)  fused L2+merge_shift (hid2 path)
    bsT = c2_ref[:, 0:1]                  # (D, 1)  fused scale bias, (1-mask)-scaled
    bhT = c2_ref[:, 1:2]                  # (D, 1)  fused shift bias, (1-mask)-scaled
    wtsT = c2_ref[:, 2:3]                 # (D, 1)  time_net weight, scale half
    wthT = c2_ref[:, 3:4]                 # (D, 1)  time_net weight, shift half

    # First layers (tanh hidden). The time column is a VALU broadcast multiply.
    hid1 = jnp.tanh(jnp.dot(w1xT, x, preferred_element_type=jnp.float32)
                    + t * w1tT + b1T)                                   # (H, TN)
    hid2 = jnp.tanh(jnp.dot(w1hxT, h, preferred_element_type=jnp.float32)
                    + t * w1htT + b1hT)                                 # (H, TN)

    # Fused second layer + merge_scale / merge_shift (scale and shift as separate matmuls,
    # so there are no sub-128 lane slices of a concatenated result).
    m_scale = (jnp.dot(ws1T, hid1, preferred_element_type=jnp.float32)
               + jnp.dot(ws2T, hid2, preferred_element_type=jnp.float32) + bsT)  # (D, TN)
    m_shift = (jnp.dot(wh1T, hid1, preferred_element_type=jnp.float32)
               + jnp.dot(wh2T, hid2, preferred_element_type=jnp.float32) + bhT)  # (D, TN)

    # time_net(t) = t * wt (no bias).  (1 - mask) is folded into m_scale / m_shift, so at
    # masked features m_scale = m_shift = 0 -> y = x * exp(0) + 0 = x; no mask epilogue.
    y_ref[...] = x * jnp.exp(m_scale * (t * wtsT)) + m_shift * (t * wthT)


def _round_up(n, m):
    return ((n + m - 1) // m) * m


def prepare_coupling_params(params):
    """One-time (per parameter set) algebraic fusion + packing.

    Hoisted out of the per-call path: coupling flows are evaluated many times per
    ODE/flow solve, so these ~10 tiny XLA ops should not be repeated every call.
    """
    (mask_vec, w1x, w1t, b1, w2, b2,
     w1hx, w1ht, b1h, w2h, b2h,
     wt, wms_a, wms_b, bms, wmh_a, wmh_b, bmh) = params
    D = w1x.shape[0]
    inv_mask = 1.0 - mask_vec                                   # (1, D)

    # Fold the input mask into the first-layer weights: (x*mask) @ W == x @ (mask^T * W).
    w1x_m = w1x * mask_vec.T                                    # (D, H)
    w1hx_m = w1hx * mask_vec.T                                  # (D, H)

    # Fuse second layers with merge_scale / merge_shift and fold (1 - mask) into the
    # fused output columns AND biases (so the masking epilogue disappears).
    ws1 = (w2[:, :D] @ wms_a) * inv_mask                        # (H, D)
    ws2 = (w2h[:, :D] @ wms_b) * inv_mask                       # (H, D)
    wh1 = (w2[:, D:] @ wmh_a) * inv_mask                        # (H, D)
    wh2 = (w2h[:, D:] @ wmh_b) * inv_mask                       # (H, D)
    bs = (b2[:, :D] @ wms_a + b2h[:, :D] @ wms_b + bms) * inv_mask   # (1, D)
    bh = (b2[:, D:] @ wmh_a + b2h[:, D:] @ wmh_b + bmh) * inv_mask   # (1, D)

    # Pack (feature-major / transposed) into 4 constant buffers.
    w1s = jnp.stack([w1x_m.T, w1hx_m.T])                                  # (2, H, D)
    c1 = jnp.concatenate([w1t.T, w1ht.T, b1.T, b1h.T], axis=1)            # (H, 4)
    w2s = jnp.stack([ws1.T, ws2.T, wh1.T, wh2.T])                         # (4, D, H)
    c2 = jnp.concatenate([bs.T, bh.T, wt[:, :D].T, wt[:, D:].T], axis=1)  # (D, 4)
    return w1s, c1, w2s, c2


def continuous_affine_coupling(x, h, t, prepared, *, tn=8192):
    """Forward pass (reverse=False, latent=None, h is not None).

    x, h: (..., D); t: (..., 1). `prepared` is the output of prepare_coupling_params.
    Returns y with the same shape as x.
    """
    w1s, c1, w2s, c2 = prepared
    orig_shape = x.shape
    D = x.shape[-1]

    # Lane-dense feature-major layout (layout plumbing in the wrapper, not compute).
    xT = x.reshape(-1, D).T               # (D, N)
    hT = h.reshape(-1, D).T               # (D, N)
    tT = t.reshape(-1, 1).T               # (1, N)
    N = xT.shape[1]

    # Big lane-aligned column tiles; no padding copy — ragged last block handled by Pallas.
    tn = _round_up(max(tn, 128), 128)
    tn = min(tn, _round_up(N, 128))
    grid = (pl.cdiv(N, tn),)

    # Per-step VMEM (double-buffered rows + constants) is ~tn/4 KiB: well within the
    # scoped default on v5e/v6e/v7x at tn=8192, so no explicit vmem_limit_bytes needed.
    def const_spec(shape):
        nd = len(shape)
        # TODO(synk): pipeline_mode=pl.Buffered(1) would halve the (tiny) constant VMEM.
        return pl.BlockSpec(shape, lambda i, _nd=nd: (0,) * _nd)

    col_spec_d = pl.BlockSpec((D, tn), lambda i: (0, i))
    col_spec_1 = pl.BlockSpec((1, tn), lambda i: (0, i))

    yT = pl.pallas_call(
        _coupling_kernel,
        out_shape=jax.ShapeDtypeStruct((D, N), jnp.float32),
        grid=grid,
        in_specs=[col_spec_d, col_spec_d, col_spec_1,
                  const_spec(w1s.shape), const_spec(c1.shape),
                  const_spec(w2s.shape), const_spec(c2.shape)],
        out_specs=pl.BlockSpec((D, tn), lambda i: (0, i)),
        compiler_params=pltpu.CompilerParams(
            dimension_semantics=("parallel",)),
    )(xT, hT, tT, w1s, c1, w2s, c2)

    return yT.T.reshape(orig_shape)


def make_params(key, dim, hidden):
    """Deterministic synthetic parameters matching the module's shapes."""
    ks = jax.random.split(key, 12)
    s = 0.2
    # latent_net: Linear(dim+1, hidden) -> tanh -> Linear(hidden, 2*dim)
    w1x = s * jax.random.normal(ks[0], (dim, hidden), jnp.float32)
    w1t = s * jax.random.normal(ks[1], (1, hidden), jnp.float32)
    b1 = jnp.zeros((1, hidden), jnp.float32)
    w2 = s * jax.random.normal(ks[2], (hidden, 2 * dim), jnp.float32)
    b2 = jnp.zeros((1, 2 * dim), jnp.float32)
    # latent_net_h: same architecture
    w1hx = s * jax.random.normal(ks[3], (dim, hidden), jnp.float32)
    w1ht = s * jax.random.normal(ks[4], (1, hidden), jnp.float32)
    b1h = jnp.zeros((1, hidden), jnp.float32)
    w2h = s * jax.random.normal(ks[5], (hidden, 2 * dim), jnp.float32)
    b2h = jnp.zeros((1, 2 * dim), jnp.float32)
    # time_net: Linear(1, 2*dim, bias=False)  (zero at t=0)
    wt = s * jax.random.normal(ks[6], (1, 2 * dim), jnp.float32)
    # merge_scale / merge_shift: Linear(2*dim, dim), split into the two input halves
    wms = s * jax.random.normal(ks[7], (2 * dim, dim), jnp.float32)
    bms = jnp.zeros((1, dim), jnp.float32)
    wmh = s * jax.random.normal(ks[8], (2 * dim, dim), jnp.float32)
    bmh = jnp.zeros((1, dim), jnp.float32)
    # mask: ordered_left_half — first dim//2 entries are 1
    mask_vec = (jnp.arange(dim) < dim // 2).astype(jnp.float32).reshape(1, dim)
    return (mask_vec, w1x, w1t, b1, w2, b2,
            w1hx, w1ht, b1h, w2h, b2h,
            wt, wms[:dim], wms[dim:], bms, wmh[:dim], wmh[dim:], bmh)


def _reference(x, h, t, params):
    """Pure-JAX reference mirroring the PyTorch forward (reverse=False, latent=None),
    written with the ORIGINAL (unfused) parameterization to validate the fusion."""
    (mask_vec, w1x, w1t, b1, w2, b2,
     w1hx, w1ht, b1h, w2h, b2h,
     wt, wms_a, wms_b, bms, wmh_a, wmh_b, bmh) = params
    D = x.shape[-1]
    mask = jnp.broadcast_to(mask_vec.reshape(D), x.shape)
    out1 = jnp.tanh((x * mask) @ w1x + t @ w1t + b1) @ w2 + b2
    scale, shift = out1[..., :D], out1[..., D:]
    out2 = jnp.tanh((h * mask) @ w1hx + t @ w1ht + b1h) @ w2h + b2h
    scale2, shift2 = out2[..., :D], out2[..., D:]
    t_emb = t * wt.reshape(2 * D)
    t_scale, t_shift = t_emb[..., :D], t_emb[..., D:]
    merged_scale = scale @ wms_a + scale2 @ wms_b + bms
    merged_shift = shift @ wmh_a + shift2 @ wmh_b + bmh
    y = x * jnp.exp(merged_scale * t_scale) + merged_shift * t_shift
    return y * (1.0 - mask) + x * mask


if __name__ == "__main__":
    batch, seq, dim, hidden = 2, 80, 8, 32   # N = batch*seq = 160 rows
    key = jax.random.PRNGKey(0)
    kx, kh, kt, kp = jax.random.split(key, 4)

    x = jax.random.normal(kx, (batch, seq, dim), jnp.float32)
    h = jax.random.normal(kh, (batch, seq, dim), jnp.float32)
    t = jax.random.uniform(kt, (batch, seq, 1), jnp.float32)
    params = make_params(kp, dim, hidden)

    # One-time fusion/packing, then the kernel call (tn=128 here to exercise a 2-step
    # grid with a ragged last block; production default is tn=8192).
    prepared = prepare_coupling_params(params)
    y = continuous_affine_coupling(x, h, t, prepared, tn=128)
    y = jax.block_until_ready(y)

    y_ref = _reference(x, h, t, params)
    assert y.shape == x.shape
    assert jnp.allclose(y, y_ref, rtol=1e-4, atol=1e-5), "mismatch vs JAX reference"
    print("KERNEL_OK")
</pallas_src>

<mosaic_0001>
module attributes {stable_mosaic.version = 11 : i64} {
  func.func @_coupling_kernel(%arg0: i32, %arg1: memref<8x128xf32, #tpu.memory_space<vmem>>, %arg2: memref<8x128xf32, #tpu.memory_space<vmem>>, %arg3: memref<1x128xf32, #tpu.memory_space<vmem>>, %arg4: memref<2x32x8xf32, #tpu.memory_space<vmem>>, %arg5: memref<32x4xf32, #tpu.memory_space<vmem>>, %arg6: memref<4x8x32xf32, #tpu.memory_space<vmem>>, %arg7: memref<8x4xf32, #tpu.memory_space<vmem>>, %arg8: memref<8x128xf32, #tpu.memory_space<vmem>>) attributes {dimension_semantics = [#tpu.dimension_semantics<parallel>], iteration_bounds = array<i64: 2>, scalar_prefetch = 0 : i64, scratch_operands = 0 : i64, tpu.core_type = #tpu.core_type<tc>, window_params = [{transform_indices = @transform_0, window_bounds = array<i64: 8, 128>}, {transform_indices = @transform_1, window_bounds = array<i64: 8, 128>}, {transform_indices = @transform_2, window_bounds = array<i64: 1, 128>}, {pipeline_mode = #tpu.pipeline_mode<synchronous>, transform_indices = @transform_3, window_bounds = array<i64: 2, 32, 8>}, {pipeline_mode = #tpu.pipeline_mode<synchronous>, transform_indices = @transform_4, window_bounds = array<i64: 32, 4>}, {pipeline_mode = #tpu.pipeline_mode<synchronous>, transform_indices = @transform_5, window_bounds = array<i64: 4, 8, 32>}, {pipeline_mode = #tpu.pipeline_mode<synchronous>, transform_indices = @transform_6, window_bounds = array<i64: 8, 4>}, {transform_indices = @transform_7, window_bounds = array<i64: 8, 128>}]} {
    %c0 = arith.constant 0 : index
    %c0_0 = arith.constant 0 : index
    %0 = vector.load %arg1[%c0, %c0_0] : memref<8x128xf32, #tpu.memory_space<vmem>>, vector<8x128xf32>
    %c0_1 = arith.constant 0 : index
    %c0_2 = arith.constant 0 : index
    %1 = vector.load %arg2[%c0_1, %c0_2] : memref<8x128xf32, #tpu.memory_space<vmem>>, vector<8x128xf32>
    %c0_3 = arith.constant 0 : index
    %c0_4 = arith.constant 0 : index
    %2 = vector.load %arg3[%c0_3, %c0_4] : memref<1x128xf32, #tpu.memory_space<vmem>>, vector<1x128xf32>
    %c0_5 = arith.constant 0 : index
    %c0_6 = arith.constant 0 : index
    %c0_7 = arith.constant 0 : index
    %3 = vector.load %arg4[%c0_5, %c0_6, %c0_7] : memref<2x32x8xf32, #tpu.memory_space<vmem>>, vector<1x32x8xf32>
    %4 = vector.shape_cast %3 : vector<1x32x8xf32> to vector<32x8xf32>
    %c1 = arith.constant 1 : index
    %c0_8 = arith.constant 0 : index
    %c0_9 = arith.constant 0 : index
    %5 = vector.load %arg4[%c1, %c0_8, %c0_9] : memref<2x32x8xf32, #tpu.memory_space<vmem>>, vector<1x32x8xf32>
    %6 = vector.shape_cast %5 : vector<1x32x8xf32> to vector<32x8xf32>
    %c0_10 = arith.constant 0 : index
    %c0_11 = arith.constant 0 : index
    %7 = vector.load %arg5[%c0_10, %c0_11] : memref<32x4xf32, #tpu.memory_space<vmem>>, vector<32x1xf32>
    %c0_12 = arith.constant 0 : index
    %c1_13 = arith.constant 1 : index
    %8 = vector.load %arg5[%c0_12, %c1_13] : memref<32x4xf32, #tpu.memory_space<vmem>>, vector<32x1xf32>
    %c0_14 = arith.constant 0 : index
    %c2 = arith.constant 2 : index
    %9 = vector.load %arg5[%c0_14, %c2] : memref<32x4xf32, #tpu.memory_space<vmem>>, vector<32x1xf32>
    %c0_15 = arith.constant 0 : index
    %c3 = arith.constant 3 : index
    %10 = vector.load %arg5[%c0_15, %c3] : memref<32x4xf32, #tpu.memory_space<vmem>>, vector<32x1xf32>
    %c0_16 = arith.constant 0 : index
    %c0_17 = arith.constant 0 : index
    %c0_18 = arith.constant 0 : index
    %11 = vector.load %arg6[%c0_16, %c0_17, %c0_18] : memref<4x8x32xf32, #tpu.memory_space<vmem>>, vector<1x8x32xf32>
    %12 = vector.shape_cast %11 : vector<1x8x32xf32> to vector<8x32xf32>
    %c1_19 = arith.constant 1 : index
    %c0_20 = arith.constant 0 : index
    %c0_21 = arith.constant 0 : index
    %13 = vector.load %arg6[%c1_19, %c0_20, %c0_21] : memref<4x8x32xf32, #tpu.memory_space<vmem>>, vector<1x8x32xf32>
    %14 = vector.shape_cast %13 : vector<1x8x32xf32> to vector<8x32xf32>
    %c2_22 = arith.constant 2 : index
    %c0_23 = arith.constant 0 : index
    %c0_24 = arith.constant 0 : index
    %15 = vector.load %arg6[%c2_22, %c0_23, %c0_24] : memref<4x8x32xf32, #tpu.memory_space<vmem>>, vector<1x8x32xf32>
    %16 = vector.shape_cast %15 : vector<1x8x32xf32> to vector<8x32xf32>
    %c3_25 = arith.constant 3 : index
    %c0_26 = arith.constant 0 : index
    %c0_27 = arith.constant 0 : index
    %17 = vector.load %arg6[%c3_25, %c0_26, %c0_27] : memref<4x8x32xf32, #tpu.memory_space<vmem>>, vector<1x8x32xf32>
    %18 = vector.shape_cast %17 : vector<1x8x32xf32> to vector<8x32xf32>
    %c0_28 = arith.constant 0 : index
    %c0_29 = arith.constant 0 : index
    %19 = vector.load %arg7[%c0_28, %c0_29] : memref<8x4xf32, #tpu.memory_space<vmem>>, vector<8x1xf32>
    %c0_30 = arith.constant 0 : index
    %c1_31 = arith.constant 1 : index
    %20 = vector.load %arg7[%c0_30, %c1_31] : memref<8x4xf32, #tpu.memory_space<vmem>>, vector<8x1xf32>
    %c0_32 = arith.constant 0 : index
    %c2_33 = arith.constant 2 : index
    %21 = vector.load %arg7[%c0_32, %c2_33] : memref<8x4xf32, #tpu.memory_space<vmem>>, vector<8x1xf32>
    %c0_34 = arith.constant 0 : index
    %c3_35 = arith.constant 3 : index
    %22 = vector.load %arg7[%c0_34, %c3_35] : memref<8x4xf32, #tpu.memory_space<vmem>>, vector<8x1xf32>
    %cst = arith.constant dense<0.000000e+00> : vector<32x128xf32>
    %23 = tpu.matmul %4, %0, %cst {dimension_numbers = #tpu.dot_dimension_numbers<[1], [0], [0], [1], [0, 0, 1, 1], [], []>} : vector<32x8xf32>, vector<8x128xf32>, vector<32x128xf32> -> vector<32x128xf32>
    %24 = vector.broadcast %2 : vector<1x128xf32> to vector<32x128xf32>
    %25 = vector.broadcast %7 : vector<32x1xf32> to vector<32x128xf32>
    %26 = arith.mulf %24, %25 : vector<32x128xf32>
    %27 = arith.addf %23, %26 : vector<32x128xf32>
    %28 = vector.broadcast %9 : vector<32x1xf32> to vector<32x128xf32>
    %29 = arith.addf %27, %28 : vector<32x128xf32>
    %30 = math.tanh %29 : vector<32x128xf32>
    %cst_36 = arith.constant dense<0.000000e+00> : vector<32x128xf32>
    %31 = tpu.matmul %6, %1, %cst_36 {dimension_numbers = #tpu.dot_dimension_numbers<[1], [0], [0], [1], [0, 0, 1, 1], [], []>} : vector<32x8xf32>, vector<8x128xf32>, vector<32x128xf32> -> vector<32x128xf32>
    %32 = vector.broadcast %2 : vector<1x128xf32> to vector<32x128xf32>
    %33 = vector.broadcast %8 : vector<32x1xf32> to vector<32x128xf32>
    %34 = arith.mulf %32, %33 : vector<32x128xf32>
    %35 = arith.addf %31, %34 : vector<32x128xf32>
    %36 = vector.broadcast %10 : vector<32x1xf32> to vector<32x128xf32>
    %37 = arith.addf %35, %36 : vector<32x128xf32>
    %38 = math.tanh %37 : vector<32x128xf32>
    %cst_37 = arith.constant dense<0.000000e+00> : vector<8x128xf32>
    %39 = tpu.matmul %12, %30, %cst_37 {dimension_numbers = #tpu.dot_dimension_numbers<[1], [0], [0], [1], [0, 0, 1, 1], [], []>} : vector<8x32xf32>, vector<32x128xf32>, vector<8x128xf32> -> vector<8x128xf32>
    %cst_38 = arith.constant dense<0.000000e+00> : vector<8x128xf32>
    %40 = tpu.matmul %14, %38, %cst_38 {dimension_numbers = #tpu.dot_dimension_numbers<[1], [0], [0], [1], [0, 0, 1, 1], [], []>} : vector<8x32xf32>, vector<32x128xf32>, vector<8x128xf32> -> vector<8x128xf32>
    %41 = arith.addf %39, %40 : vector<8x128xf32>
    %42 = vector.broadcast %19 : vector<8x1xf32> to vector<8x128xf32>
    %43 = arith.addf %41, %42 : vector<8x128xf32>
    %cst_39 = arith.constant dense<0.000000e+00> : vector<8x128xf32>
    %44 = tpu.matmul %16, %30, %cst_39 {dimension_numbers = #tpu.dot_dimension_numbers<[1], [0], [0], [1], [0, 0, 1, 1], [], []>} : vector<8x32xf32>, vector<32x128xf32>, vector<8x128xf32> -> vector<8x128xf32>
    %cst_40 = arith.constant dense<0.000000e+00> : vector<8x128xf32>
    %45 = tpu.matmul %18, %38, %cst_40 {dimension_numbers = #tpu.dot_dimension_numbers<[1], [0], [0], [1], [0, 0, 1, 1], [], []>} : vector<8x32xf32>, vector<32x128xf32>, vector<8x128xf32> -> vector<8x128xf32>
    %46 = arith.addf %44, %45 : vector<8x128xf32>
    %47 = vector.broadcast %20 : vector<8x1xf32> to vector<8x128xf32>
    %48 = arith.addf %46, %47 : vector<8x128xf32>
    %49 = vector.broadcast %2 : vector<1x128xf32> to vector<8x128xf32>
    %50 = vector.broadcast %21 : vector<8x1xf32> to vector<8x128xf32>
    %51 = arith.mulf %49, %50 : vector<8x128xf32>
    %52 = arith.mulf %43, %51 : vector<8x128xf32>
    %53 = math.exp %52 : vector<8x128xf32>
    %54 = arith.mulf %0, %53 : vector<8x128xf32>
    %55 = vector.broadcast %2 : vector<1x128xf32> to vector<8x128xf32>
    %56 = vector.broadcast %22 : vector<8x1xf32> to vector<8x128xf32>
    %57 = arith.mulf %55, %56 : vector<8x128xf32>
    %58 = arith.mulf %48, %57 : vector<8x128xf32>
    %59 = arith.addf %54, %58 : vector<8x128xf32>
    %c0_41 = arith.constant 0 : index
    %c0_42 = arith.constant 0 : index
    %60 = vector.load %arg8[%c0_41, %c0_42] : memref<8x128xf32, #tpu.memory_space<vmem>>, vector<8x128xf32>
    tpu.vector_store %arg8[%c0_41, %c0_42], %59 {strides = array<i32>} : memref<8x128xf32, #tpu.memory_space<vmem>>, vector<8x128xf32>,
    return
  }
  func.func @transform_0(%arg0: i32) -> (i32, i32) {
    %c0_i32 = arith.constant 0 : i32
    %c0_i32_0 = arith.constant 0 : i32
    return %c0_i32, %arg0 : i32, i32
  }
  func.func @transform_1(%arg0: i32) -> (i32, i32) {
    %c0_i32 = arith.constant 0 : i32
    %c0_i32_0 = arith.constant 0 : i32
    return %c0_i32, %arg0 : i32, i32
  }
  func.func @transform_2(%arg0: i32) -> (i32, i32) {
    %c0_i32 = arith.constant 0 : i32
    %c0_i32_0 = arith.constant 0 : i32
    return %c0_i32, %arg0 : i32, i32
  }
  func.func @transform_3(%arg0: i32) -> (i32, i32, i32) {
    %c0_i32 = arith.constant 0 : i32
    %c0_i32_0 = arith.constant 0 : i32
    %c0_i32_1 = arith.constant 0 : i32
    %c0_i32_2 = arith.constant 0 : i32
    return %c0_i32, %c0_i32_0, %c0_i32_1 : i32, i32, i32
  }
  func.func @transform_4(%arg0: i32) -> (i32, i32) {
    %c0_i32 = arith.constant 0 : i32
    %c0_i32_0 = arith.constant 0 : i32
    %c0_i32_1 = arith.constant 0 : i32
    return %c0_i32, %c0_i32_0 : i32, i32
  }
  func.func @transform_5(%arg0: i32) -> (i32, i32, i32) {
    %c0_i32 = arith.constant 0 : i32
    %c0_i32_0 = arith.constant 0 : i32
    %c0_i32_1 = arith.constant 0 : i32
    %c0_i32_2 = arith.constant 0 : i32
    return %c0_i32, %c0_i32_0, %c0_i32_1 : i32, i32, i32
  }
  func.func @transform_6(%arg0: i32) -> (i32, i32) {
    %c0_i32 = arith.constant 0 : i32
    %c0_i32_0 = arith.constant 0 : i32
    %c0_i32_1 = arith.constant 0 : i32
    return %c0_i32, %c0_i32_0 : i32, i32
  }
  func.func @transform_7(%arg0: i32) -> (i32, i32) {
    %c0_i32 = arith.constant 0 : i32
    %c0_i32_0 = arith.constant 0 : i32
    return %c0_i32, %arg0 : i32, i32
  }
}

</mosaic_0001>

<bundles_post_ra>
// kernel: tpu_custom_call.1
= control target key start
LH: loop header
LB: loop body
LE: loop exit
PB: predicated region body
PF: predicated region fallthrough
CT: control target
= control target key end

     0   :  { %12 = vsyncpa [#allocation3], 0  ;;  %s1548_s0 = inlined_call_operand.vmem [shape: f32[8,160], index: 0, kind: input, shape index: {}]   ;;  %s1549_s1 = inlined_call_operand.vmem [shape: f32[8,160], index: 1, kind: input, shape index: {}]   ;;  %s1550_s2 = inlined_call_operand.vmem [shape: f32[1,160], index: 2, kind: input, shape index: {}]   ;;  %s1551_s3 = inlined_call_operand.vmem [shape: f32[2,32,8], index: 3, kind: input, shape index: {}]   ;;  %s1552_s4 = inlined_call_operand.vmem [shape: f32[32,4], index: 4, kind: input, shape index: {}]   ;;  %s1553_s5 = inlined_call_operand.vmem [shape: f32[4,8,32], index: 5, kind: input, shape index: {}]   ;;  %s1554_s6 = inlined_call_operand.vmem [shape: f32[8,4], index: 6, kind: input, shape index: {}]   ;;  %s1555_s7 = inlined_call_operand.hbm [shape: f32[8,160], index: 7, kind: output, shape index: {}]  }
   0x1   :  { %14 = vsyncpa [#allocation3 + $0x1], 0  ;;  %s1347_s24 = smov 0   ;;  %s1349_s25 = smov 0  }
   0x2   :  { %s1351_s26 = smov 0   ;;  %s1353_s27 = smov 0  }
   0x3 LB: > { %s1368_s28 = sadd.s32 4294967295, %s1298_s27   ;;  %s1037_s29 = sadd.s32 4294967294, %s1298_s27   ;;  %s1298_s27 = sphi %s1353_s27, %s1561_s27   ;;  %s1294_s26 = sphi %s1351_s26, %s1560_s26   ;;  %s1290_s25 = sphi %s1349_s25, %s1559_s25   ;;  %s1286_s24 = sphi %s1347_s24, %s1558_s24  }
   0x4   : > { %s1372_s30 = sadd.s32 1, %s1298_s27   ;;  %s189_s8 = sadd.s32 1, %s1294_s26 }
   0x5   : > { %s186_s9 = ssub.s32 %s1298_s27, %s1372_s30  ;;  %p199_p0 = scmp.ne.s32.totalorder %s1294_s26, %s1290_s25 }
   0x6   : > { %p187_p1 = scmp.eq.s32.totalorder %s186_s9, 0  ;;  %p200_p2 = scmp.eq.s32.totalorder %s1368_s28, 1 }
   0x7   : > { %p205_p3 = scmp.ne.s32.totalorder %s1290_s25, %s1286_s24  ;;  %p206_p4 = scmp.eq.s32.totalorder %s1037_s29, 1 }
   0x8   : > { %s1383_s10 = scalar_select %p187_p1, %s1294_s26, %s189_s8  }
   0x9   : > { %p1385_p5 = por %p200_p2, %p199_p0  ;;  %p1389_p6 = por %p206_p4, %p205_p3 }
   0xa   : > { %p1040_p7 = scmp.ge.s32.totalorder %s1298_s27, 1  ;;  %p256_p8 = scmp.lt.s32.totalorder %s1298_s27, 3 }
   0xc   : > { %p257_p9 = pnand %p1040_p7, %p256_p8 }
   0xd   : > { %p294_p10 = scmp.lt.s32.totalorder (!%p257_p9), %s1368_s28, 1  ;;  %s291_s18 = sand.u32 (!%p257_p9), 1, %s1290_s25  }
   0xe   : > { %260 = sbr.rel (%p257_p9) target bundleno = 481 (0x1e1), region = 48  ;;  %s1041_s19 = sshll.u32 (!%p257_p9), %s291_s18, 3 }
   0xf   : > { %s1065_s20 = sshll.u32 (!%p257_p9), %s1368_s28, 7  ;;  %s293_s21 = scalar_lea.vmem (!%p257_p9), [#allocation2], %s1041_s19 }
  0x10   : > { %s957_s23 = sshll.u32 (!%p257_p9), %s293_s21, 4  ;;  %s955_s29 = scalar_lea.hbm (!%p257_p9), %s1555_s7, %s1065_s20  ;;  %s958_s23 = int_to_ptr.vmem [resolvable:$true] %s957_s23 }
  0x11   : > { %s1238_s9 = scalar_lea.vmem (!%p257_p9), %s958_s23, 128  ;;  %s1306_s13 = smov (!%p257_p9), [#allocation2]  }
  0x12   : > { %p1239_p11 = scmp.ne.s32.totalorder (!%p257_p9), %s958_s23, %s1238_s9 }
  0x13   : > { %v308_v0 = vld [vmem:[%s1551_s3] sm:$0xff]  ;;  %vm359_vm0 = vcmask 64512   ;;  %s1405_s17 = scalar_select %p294_p10, %s1368_s28, 1  ;;  %v1300_v2 = vmov 0   ;;  %v319_v3 = vld [vmem:[%s1552_s4 + $0x10] sm:$0xff]  ;;  %v1301_v4 = vmov 1  }
  0x14   : > { %v1044_v1 = vld [vmem:[%s1551_s3 + $0x20] sm:$0xff]  ;;  %1100 = vmatprep.mubr.msk.f32.mxu0 %vm359_vm0, %v308_v0  ;;  %1204 = vset.pattern.permute.xlu1 %v1300_v2  ;;  %v320_v5 = vld [vmem:[%s1552_s4 + $0x18] sm:$0xff]  ;;  %v309_v6 = vld [vmem:[%s1551_s3 + $0x8] sm:$0xff]  ;;  %v1302_v14 = vmov 2   ;;  %v1303_v17 = vmov 3   ;;  %v1304_v19 = vmov 0.0   ;;  %p1240_p12 = pnand %p1239_p11, %p1385_p5 }
  0x15   : > { %1108 = vmatprep.mubr.msk.f32.mxu1 %vm359_vm0, %v1044_v1  ;;  %1203 = vset.pattern.permute.xlu0 %v1301_v4  ;;  %s1042_s22 = sshll.u32 %s1405_s17, 3  ;;  %v1045_v9 = vld [vmem:[%s1551_s3 + $0x28] sm:$0xff]  ;;  %v310_v10 = vld [vmem:[%s1551_s3 + $0x10] sm:$0xff]  ;;  %v311_v12 = vld [vmem:[%s1551_s3 + $0x18] sm:$0xff]  ;;  %vm1305_vm1 = vmmov 0   ;;  %vm622_vm2 = vcmask 261120  }
  0x16   : > { %347 = vperm.xlu1 %1204, %v319_v3   ;;  %494 = vperm.xlu0 %1203, %v320_v5   ;;  %s297_s8 = scalar_lea.vmem %s1548_s0, %s1042_s22  ;;  %s301_s14 = scalar_lea.vmem %s1549_s1, %s1042_s22  ;;  %v1046_v11 = vld [vmem:[%s1551_s3 + $0x30] sm:$0xff]  ;;  %v1047_v13 = vld [vmem:[%s1551_s3 + $0x38] sm:$0xff]  ;;  %v318_v15 = vld [vmem:[%s1552_s4 + $0x8] sm:$0xff] }
  0x17   : > { %v1423_v7 = vld [vmem:[%s297_s8] sm:$0xff]  ;;  %s304_s22 = scalar_lea.vmem %s1550_s2, %s1405_s17  ;;  %s944_s8 = scalar_lea.sflag [#allocation3], %s291_s18 }
  0x18   : > { %v306_v8 = vld [vmem:[%s301_s14] sm:$0xff]  ;;  %1098 = vmatprep.subr.mxu0 %v1423_v7  ;;  %p1241_p13 = pneg %p1240_p12  ;;  %s1242_s14 = sshll.u32 %s1306_s13, 4  ;;  %s1243_s14 = int_to_ptr.vmem [resolvable:$false] %s1242_s14 }
  0x19   : > { %1106 = vmatprep.subr.mxu1 %v306_v8  ;;  %1099 = vmatpush3.msra.mxu0 %v1423_v7  ;;  %v317_v16 = vld [vmem:[%s1552_s4] sm:$0xff]  ;;  %s1244_s28 = scalar_lea.vmem %s1243_s14, 256  ;;  %p1245_p0 = scmp.lt.s32.totalorder %s958_s23, %s1243_s14 }
  0x1a   : > { %1107 = vmatpush3.msra.mxu1 %v306_v8  ;;  %1101 = vmatmul.mubr.msk.f32.vlgmr.msra.gmra.mxu0 %vm359_vm0, %v309_v6  ;;  %v328_v18 = vld [vmem:[%s1554_s6] sm:$0xff]  ;;  %p1246_p1 = scmp.lt.s32.totalorder %s1244_s28, %s1238_s9 }
  0x1b   : > { %1109 = vmatmul.mubr.msk.f32.vlgmr.msra.gmra.mxu1 %vm359_vm0, %v1045_v9  ;;  %1103 = vmatprep.mubr.msk.f32.mxu0 %vm359_vm0, %v310_v10  ;;  %v1467_v34 = vld [vmem:[%s304_s22] ss:$0 sm:$0xff] }
  0x1c   : > { %1111 = vmatprep.mubr.msk.f32.mxu1 %vm359_vm0, %v1046_v11  ;;  %1205 = vset.pattern.permute.xlu1 %v1301_v4  ;;  %p1247_p2 = por %p1246_p1, %p1245_p0 }
  0x1d   : > { %1207 = vset.pattern.permute.xlu0 %v1302_v14  ;;  %490 = vperm.xlu1 %1205, %v319_v3  }
  0x1e   : > { %470 = vperm.xlu0 %1207, %v320_v5   ;;  %1104 = vmatmul.mubr.msk.f32.gmra.mxu0 %vm359_vm0, %v311_v12  ;;  %v321_v12 = vld [vmem:[%s1553_s5] sm:$0xff]  ;;  %p1248_p3 = pnand %p1247_p2, %p1241_p13 }
  0x1f   : > { %1112 = vmatmul.mubr.msk.f32.gmra.mxu1 %vm359_vm0, %v1047_v13  ;;  %1114 = vmatprep.subr.mxu0 %v1304_v19 }
  0x20   : > { %1125 = vmatprep.subr.mxu1 %v1304_v19  ;;  %1122 = vmatprep.mubr.msk.f32.mxu0 %vm1305_vm1, %v1304_v19 }
  0x21   : > { %1206 = vset.pattern.permute.xlu1 %v1300_v2  ;;  %1133 = vmatprep.mubr.msk.f32.mxu1 %vm1305_vm1, %v1304_v19 }
  0x22   : > { %1208 = vset.pattern.permute.xlu0 %v1300_v2  ;;  %342 = vperm.xlu1 %1206, %v318_v15  }
  0x23   : > { %352 = vperm.xlu0 %1208, %v320_v5  }
  0x26   : > { %1209 = vset.pattern.permute.xlu1 %v1301_v4 }
  0x27   : > { %337 = vperm.xlu0 %1208, %v317_v16   ;;  %486 = vperm.xlu1 %1209, %v318_v15  }
  0x2b   : > { %1213 = vset.pattern.permute.xlu0 %v1303_v17  ;;  %1210 = vset.pattern.permute.xlu1 %v1303_v17 }
  0x2c   : > { %607 = vperm.xlu0 %1213, %v319_v3   ;;  %611 = vperm.xlu1 %1210, %v320_v5  }
  0x30   : > { %1216 = vset.pattern.permute.xlu0 %v1302_v14  ;;  %1211 = vset.pattern.permute.xlu1 %v1302_v14 }
  0x31   : > { %458 = vperm.xlu0 %1216, %v317_v16   ;;  %466 = vperm.xlu1 %1211, %v319_v3  }
  0x35   : > { %927 = vperm.xlu0 %1216, %v328_v18   ;;  %1212 = vset.pattern.permute.xlu1 %v1301_v4 }
  0x36   : > { %482 = vperm.xlu1 %1212, %v317_v16  }
  0x39   : > { %1219 = vset.pattern.permute.xlu0 %v1303_v17 }
  0x3a   : > { %936 = vperm.xlu0 %1219, %v328_v18   ;;  %1214 = vset.pattern.permute.xlu1 %v1302_v14  ;;  %v1048_v14 = vld [vmem:[%s1553_s5 + $0x8] sm:$0xff] }
  0x3b   : > { %462 = vperm.xlu1 %1214, %v318_v15  }
  0x3f   : > { %1215 = vset.pattern.permute.xlu1 %v1303_v17  ;;  %v1049_v17 = vld [vmem:[%s1553_s5 + $0x10] sm:$0xff] }
  0x40   : > { %603 = vperm.xlu1 %1215, %v318_v15  }
  0x44   : > { %599 = vperm.xlu1 %1215, %v317_v16   ;;  %v1050_v16 = vld [vmem:[%s1553_s5 + $0x18] sm:$0xff] }
  0x48   : > { %1217 = vset.pattern.permute.xlu1 %v1300_v2 }
  0x49   : > { %771 = vperm.xlu1 %1217, %v328_v18  }
  0x4d   : > { %1218 = vset.pattern.permute.xlu1 %v1301_v4 }
  0x4e   : > { %922 = vperm.xlu1 %1218, %v328_v18  }
  0x91   : > { %v348_v20 = vpop.permute.xlu1 %347  ;;  %v495_v24 = vpop.permute.xlu0 %494 }
  0x92   : > { %v357_v41 = vmul.f32 %v1467_v34, %v348_v20  ;;  %v500_v43 = vmul.f32 %v1467_v34, %v495_v24 }
  0x98   : > { %v491_v21 = vpop.permute.xlu1 %490 }
  0x99   : > { %v471_v26 = vpop.permute.xlu0 %470  ;;  %v499_v46 = vmul.f32 %v1467_v34, %v491_v21 }
  0x9d   : > { %v343_v22 = vpop.permute.xlu1 %342 }
  0x9e   : > { %v353_v28 = vpop.permute.xlu0 %352  ;;  %v356_v38 = vmul.f32 %v1467_v34, %v343_v22 }
  0x9f   : > { %v358_v39 = vmul.f32 %v1467_v34, %v353_v28 }
  0xa2   : > { %v487_v23 = vpop.permute.xlu1 %486  ;;  %v338_v30 = vpop.permute.xlu0 %337 }
  0xa3   : > { %v498_v42 = vmul.f32 %v1467_v34, %v487_v23  ;;  %v355_v47 = vmul.f32 %v1467_v34, %v338_v30 }
  0xa7   : > { %v612_v25 = vpop.permute.xlu1 %611  ;;  %v608_v35 = vpop.permute.xlu0 %607 }
  0xac   : > { %v467_v27 = vpop.permute.xlu1 %466  ;;  %v459_v60 = vpop.permute.xlu0 %458 }
  0xb0   : > { %v928_v18 = vpop.permute.xlu0 %927 }
  0xb1   : > { %v483_v29 = vpop.permute.xlu1 %482 }
  0xb2   : > { %v497_v50 = vmul.f32 %v1467_v34, %v483_v29 }
  0xb6   : > { %v463_v31 = vpop.permute.xlu1 %462 }
  0xbb   : > { %v604_v40 = vpop.permute.xlu1 %603 }
  0xbf   : > { %v600_v63 = vpop.permute.xlu1 %599 }
  0xc4   : > { %v772_v22 = vpop.permute.xlu1 %771 }
  0xda   : > { %v1102_v32 = vpop.f32.mrf.mxu0 }
  0xdb   : > { %v1110_v33 = vpop.f32.mrf.mxu1  ;;  %v444_v48 = vadd.f32 %v1102_v32, %v356_v38 }
  0xdc   : > { %v438_v36 = vpop.f32.mrf.mxu0  ;;  %v585_v51 = vadd.f32 %v1110_v33, %v498_v42 }
  0xdd   : > { %v579_v37 = vpop.f32.mrf.mxu1  ;;  %v439_v55 = vadd.f32 %v438_v36, %v355_v47  ;;  %v474_v62 = vadd.f32 %v463_v31, %v444_v48  ;;  %v937_v36 = vpop.permute.xlu0 %936 }
  0xde   : > { %v1105_v44 = vpop.f32.mrf.mxu0  ;;  %v580_v59 = vadd.f32 %v579_v37, %v497_v50  ;;  %v615_v2 = vadd.f32 %v604_v40, %v585_v51  ;;  %v939_v38 = vmul.f32 %v1467_v34, %v937_v36 }
  0xdf   : > { %v1113_v45 = vpop.f32.mrf.mxu1  ;;  %v454_v49 = vadd.f32 %v1105_v44, %v358_v39  ;;  %v473_v3 = vadd.f32 %v459_v60, %v439_v55 }
  0xe0   : > { %v595_v52 = vadd.f32 %v1113_v45, %v500_v43  ;;  %v448_v53 = vpop.f32.mrf.mxu0  ;;  %v614_v4 = vadd.f32 %v600_v63, %v580_v59 }
  0xe1   : > { %v589_v54 = vpop.f32.mrf.mxu1  ;;  %v476_v56 = vadd.f32 %v471_v26, %v454_v49  ;;  %v449_v57 = vadd.f32 %v448_v53, %v357_v41  ;;  %v930_v26 = vmul.f32 %v1467_v34, %v928_v18 }
  0xe2   : > { %v590_v58 = vadd.f32 %v589_v54, %v499_v46  ;;  %v617_v61 = vadd.f32 %v612_v25, %v595_v52 }
  0xe3   : > { %1220 = vtanh.f32 %v476_v56  ;;  %v475_v0 = vadd.f32 %v467_v27, %v449_v57 }
  0xe4   : > { %v616_v1 = vadd.f32 %v608_v35, %v590_v58  ;;  %1222 = vtanh.f32 %v617_v61  ;;  %v923_v35 = vpop.permute.xlu1 %922 }
  0xe5   : > { %1224 = vtanh.f32 %v475_v0 }
  0xe6   : > { %1226 = vtanh.f32 %v616_v1 }
  0xe7   : > { %1228 = vtanh.f32 %v474_v62 }
  0xe8   : > { %1230 = vtanh.f32 %v615_v2 }
  0xe9   : > { %1232 = vtanh.f32 %v473_v3 }
  0xea   : > { %1234 = vtanh.f32 %v614_v4 }
  0xf0   : > { %v1221_v5 = vpop.eup %1220 }
  0xf1   : > { %v1223_v6 = vpop.eup %1222  ;;  %1126 = vmatpush3.msra.mxu1 %v1221_v5 }
  0xf2   : > { %v1225_v8 = vpop.eup %1224  ;;  %1115 = vmatpush3.msra.mxu0 %v1223_v6  ;;  %1127 = vmatprep.subr.mxu1 %v1304_v19 }
  0xf3   : > { %v1227_v9 = vpop.eup %1226  ;;  %1116 = vmatprep.subr.mxu0 %v1304_v19  ;;  %1128 = vmatpush3.msra.mxu1 %v1225_v8 }
  0xf4   : > { %v1229_v10 = vpop.eup %1228  ;;  %1117 = vmatpush3.msra.mxu0 %v1227_v9  ;;  %1129 = vmatprep.subr.mxu1 %v1304_v19 }
  0xf5   : > { %v1231_v11 = vpop.eup %1230  ;;  %1118 = vmatprep.subr.mxu0 %v1304_v19  ;;  %1130 = vmatpush3.msra.mxu1 %v1229_v10 }
  0xf6   : > { %v1233_v13 = vpop.eup %1232  ;;  %1119 = vmatpush3.msra.mxu0 %v1231_v11  ;;  %1131 = vmatprep.subr.mxu1 %v1304_v19 }
  0xf7   : > { %v1235_v15 = vpop.eup %1234  ;;  %1120 = vmatprep.subr.mxu0 %v1304_v19  ;;  %1132 = vmatpush3.msra.mxu1 %v1233_v13 }
  0xf8   : > { %1121 = vmatpush3.msra.mxu0 %v1235_v15  ;;  %1134 = vmatmul.mubr.msk.f32.vlgmr.msra.gmra.mxu1 %vm622_vm2, %v321_v12 }
  0xf9   : > { %1123 = vmatmul.mubr.msk.f32.vlgmr.msra.gmra.mxu0 %vm622_vm2, %v1048_v14  ;;  %1136 = vmatprep.subr.mxu0 %v1304_v19 }
  0xfa   : > { %1147 = vmatprep.subr.mxu1 %v1304_v19  ;;  %1137 = vmatpush3.msra.mxu0 %v1223_v6 }
  0xfb   : > { %1148 = vmatpush3.msra.mxu1 %v1221_v5  ;;  %1138 = vmatprep.subr.mxu0 %v1304_v19 }
  0xfc   : > { %1149 = vmatprep.subr.mxu1 %v1304_v19  ;;  %1139 = vmatpush3.msra.mxu0 %v1227_v9 }
  0xfd   : > { %1150 = vmatpush3.msra.mxu1 %v1225_v8  ;;  %1140 = vmatprep.subr.mxu0 %v1304_v19 }
  0xfe   : > { %1151 = vmatprep.subr.mxu1 %v1304_v19  ;;  %1141 = vmatpush3.msra.mxu0 %v1231_v11 }
  0xff   : > { %1152 = vmatpush3.msra.mxu1 %v1229_v10  ;;  %1142 = vmatprep.subr.mxu0 %v1304_v19 }
 0x100   : > { %1153 = vmatprep.subr.mxu1 %v1304_v19  ;;  %1143 = vmatpush3.msra.mxu0 %v1235_v15 }
 0x101   : > { %1154 = vmatpush3.msra.mxu1 %v1233_v13  ;;  %1144 = vmatprep.mubr.msk.f32.mxu0 %vm1305_vm1, %v1304_v19 }
 0x102   : > { %1155 = vmatprep.mubr.msk.f32.mxu1 %vm1305_vm1, %v1304_v19  ;;  %1145 = vmatmul.mubr.msk.f32.vlgmr.msra.gmra.mxu0 %vm622_vm2, %v1050_v16 }
 0x103   : > { %1156 = vmatmul.mubr.msk.f32.vlgmr.msra.gmra.mxu1 %vm622_vm2, %v1049_v17 }
 0x1b8   : > { %v765_v20 = vpop.f32.mrf.mxu1 }
 0x1b9   : > { %v692_v21 = vpop.f32.mrf.mxu0 }
 0x1ba   : > { %v766_v23 = vadd.f32 %v765_v20, %v692_v21  ;;  %v1135_v24 = vpop.f32.mrf.mxu1 }
 0x1bb   : > { %v1124_v25 = vpop.f32.mrf.mxu0 }
 0x1bc   : > { %v774_v27 = vadd.f32 %v772_v22, %v766_v23 }
 0x1be   : > { %v931_v28 = vmul.f32 %v930_v26, %v774_v27 }
 0x1c0   : > { %v932_v29 = vmul.f32 1.442695, %v931_v28 }
 0x1c2   : > { %1236 = vpow2.f32 %v932_v29  ;;  %v844_v19 = vpop.f32.mrf.mxu0 }
 0x1c3   : > { %v917_v30 = vpop.f32.mrf.mxu1 }
 0x1c4   : > { %v1146_v31 = vpop.f32.mrf.mxu0  ;;  %v918_v33 = vadd.f32 %v917_v30, %v844_v19 }
 0x1c5   : > { %v1157_v32 = vpop.f32.mrf.mxu1 }
 0x1c6   : > { %v925_v37 = vadd.f32 %v923_v35, %v918_v33 }
 0x1c8   : > { %v940_v39 = vmul.f32 %v939_v38, %v925_v37 }
 0x1cf   : > { %v1237_v40 = vpop.eup %1236 }
 0x1d0   : > { %v934_v41 = vmul.f32 %v1237_v40, %v1423_v7 }
 0x1d2   : > { %v941_v42 = vadd.f32 %v940_v39, %v934_v41 }
 0x1d4   : > { %942 = vst [vmem:[%s293_s21] sm:$0xff] %v941_v42 }
 0x1d5   : > { %1251 = shalt.err (!%p1248_p3)
}
 0x1d6   : > { %s1252_s15 = scalar_lea.hbm %s955_s29, 128  ;;  %s1256_s19 = scalar_lea.hbm %s1555_s7, 256 }
 0x1d7   : > { %p1253_p4 = scmp.ne.s32.totalorder %s955_s29, %s1252_s15  ;;  %p1257_p9 = scmp.lt.s32.totalorder %s955_s29, %s1555_s7 }
 0x1d8   : > { %p1258_p10 = scmp.lt.s32.totalorder %s1256_s19, %s1252_s15 }
 0x1d9   : > { %p1254_p7 = pnand %p1253_p4, %p1385_p5 }
 0x1da   : > { %p1259_p11 = por %p1258_p10, %p1257_p9 }
 0x1db   : > { %p1255_p8 = pneg %p1254_p7 }
 0x1dd   : > { %p1260_p12 = pnand %p1259_p11, %p1255_p8 }
 0x1df   : > { %1263 = shalt.err (!%p1260_p12)
}
 0x1e0   : > { %1158 = dma.vmem_to_hbm [thread:$0]  (%p1385_p5), %s958_s23, 128, %s955_s29, %s944_s8  }
 0x1e1 PF: > { %p1164_p13 = scmp.ge.s32.totalorder %s1298_s27, 2  ;;  %s969_s22 = sand.u32 1, %s1286_s24  }
 0x1e2   : > { %s970_s17 = scalar_lea.sflag [#allocation3], %s969_s22 }
 0x1e3   : > { %p1161_p0 = pnand %p1164_p13, %p1389_p6 }
 0x1e5   : > { %p1162_p1 = pneg %p1161_p0 }
 0x1e7   : > { %1281 = dma.done.wait (%p1162_p1), %s970_s17, 128  }
 0x1e8   : > { %1283 = vsyncadd (%p1162_p1), %s970_s17, 4294967168  ;;  %p17_p2 = scmp.ge.s32.totalorder %s1372_s30, 4   ;;  %s1558_s24 = smov %s1290_s25 }
 0x1e9   : > { %s1559_s25 = smov %s1294_s26  ;;  %s1560_s26 = smov %s1383_s10 }
 0x1ea   : > { %s1561_s27 = smov %s1372_s30  ;;  %19 = sbr.rel (!%p17_p2) target bundleno = 3 (0x3), region = 93 }
 0x1ef   :  { %975 = vsyncpa [#allocation3], 1 }
 0x1f0   :  { %977 = vsyncpa [#allocation3 + $0x1], 1 }

</bundles_post_ra>
